<compile_context>
chip_gen: v5e
topology: v5e:2x2
jax: 0.10.0
libtpu: 0.0.40
codegen_flags: <defaults>
</compile_context>

<pallas_src>
import jax
import jax.numpy as jnp
from jax.experimental import pallas as pl
from jax.experimental.pallas import tpu as pltpu

_EPS = 1e-5
_VREP = 8  # sublane replication for per-feature vectors (aligned (8, D) tiles)


# ------------------------------- kernel ------------------------------------

def _baseline_kernel(x_ref, p_ref, out_ref):
    # x_ref : (B, D)              f32, zero-padded from (B, input_dim)
    # p_ref : (5*D + 11*8, D)     f32, single parameter slab:
    #           rows [i*D : (i+1)*D]            -> weight i, zero-padded DxD
    #                                              [w1, b1.wa, b1.wb, b2.wa, b2.wb]
    #           rows [5*D + 8*j : 5*D + 8*j+8]  -> vector j replicated over 8
    #                                              sublanes:
    #                                              [b1, g1a, t1a, g1b, t1b,
    #                                               g2a, t2a, g2b, t2b, w2_row, b2]
    # out_ref: (B, 1)             f32
    B = x_ref.shape[0]
    D = p_ref.shape[1]
    voff = 5 * D
    inv_b = 1.0 / B  # NOTE: whole batch resident in this block (no batch grid).

    def W(i):
        # weight offsets are multiples of D (=24, multiple of 8): aligned reads
        return p_ref[i * D:(i + 1) * D, :]

    def V(j):
        # 8-row-aligned, pre-broadcast vector tile -> (B, D), no XLU extract
        base = voff + _VREP * j
        return p_ref[base:base + B, :]

    def bn(h, gamma, beta):
        # training-mode BatchNorm1d, single statistics pass.
        mean = jnp.sum(h, axis=0, keepdims=True) * inv_b
        ex2 = jnp.sum(h * h, axis=0, keepdims=True) * inv_b
        var = jnp.maximum(ex2 - mean * mean, 0.0)   # guard one-pass cancellation
        inv_std = jax.lax.rsqrt(var + _EPS)          # EUP
        mg = mean * gamma                            # overlaps with rsqrt in flight
        scale = gamma * inv_std
        shift = beta - mg * inv_std
        return h * scale + shift

    def big_block(h, wa, ga, ta, wb, gb, tb):
        # BN-feeding linears carry no bias: batch-mean subtraction cancels it.
        y = jnp.maximum(
            bn(jnp.dot(h, wa, preferred_element_type=jnp.float32), ga, ta), 0.0)
        y = bn(jnp.dot(y, wb, preferred_element_type=jnp.float32), gb, tb)
        # in_dim == out_dim for both BigBlocks -> identity residual
        return jnp.maximum(y + h, 0.0)

    x = x_ref[...]                                             # (B, D)

    # layer1: padded x columns hit zero weight rows -> exact, no slicing
    h = jnp.dot(x, W(0), preferred_element_type=jnp.float32) + V(0)

    # big1
    h = big_block(h, W(1), V(1), V(2), W(2), V(3), V(4))
    # big2
    h = big_block(h, W(3), V(5), V(6), W(4), V(7), V(8))

    # head: VPU multiply + lane reduction (avoids an N=1 MXU matmul)
    out_ref[...] = jnp.sum(h * V(9), axis=-1, keepdims=True) + V(10)[:, 0:1]


def baseline_forward(x, p_slab):
    """x: (B, input_dim) f32; p_slab from pack_baseline_params. Returns (B,)."""
    B, in_dim = x.shape
    D = p_slab.shape[1]
    assert B <= _VREP, "vector tiles are replicated over 8 sublanes (B <= 8)"

    # zero-pad x host-side so all five matmuls are shape-uniform (B, D)x(D, D)
    x_pad = jnp.zeros((B, D), jnp.float32).at[:, :in_dim].set(x)

    cost = pl.CostEstimate(
        flops=2 * B * D * D * 5 + 40 * B * D,     # 5 matmuls + elementwise
        transcendentals=4 * D,                    # 4 BN rsqrt passes
        bytes_accessed=(x_pad.size + p_slab.size + B) * 4,
    )
    vmem = pl.BlockSpec(memory_space=pltpu.MemorySpace.VMEM)
    out = pl.pallas_call(
        _baseline_kernel,
        out_shape=jax.ShapeDtypeStruct((B, 1), jnp.float32),
        in_specs=[vmem, vmem],
        out_specs=vmem,
        cost_estimate=cost,
    )(x_pad, p_slab)
    return out[:, 0]  # squeeze(dim=1)


# ---------------- parameter construction (deterministic) -------------------

def _linear_params(key, in_dim, out_dim):
    # PyTorch-style uniform(-1/sqrt(fan_in), 1/sqrt(fan_in)); weight stored as
    # (in_dim, out_dim) so the kernel computes x @ W directly.
    kw, kb = jax.random.split(key)
    bound = 1.0 / (in_dim ** 0.5)
    w = jax.random.uniform(kw, (in_dim, out_dim), jnp.float32, -bound, bound)
    b = jax.random.uniform(kb, (1, out_dim), jnp.float32, -bound, bound)
    return w, b


def _bn_params(dim):
    # default PyTorch init: gamma = 1, beta = 0
    return jnp.ones((1, dim), jnp.float32), jnp.zeros((1, dim), jnp.float32)


def make_baseline_params(key, input_dim):
    hidden_dim = int(1.5 * input_dim)
    keys = jax.random.split(key, 6)

    w1, b1 = _linear_params(keys[0], input_dim, hidden_dim)

    def big_block_params(ka, kb):
        wa, ba = _linear_params(ka, hidden_dim, input_dim)   # SmallBlock(hid->in)
        ga, ta = _bn_params(input_dim)
        wb, bb = _linear_params(kb, input_dim, hidden_dim)   # SmallBlock(in->hid)
        gb, tb = _bn_params(hidden_dim)
        return (wa, ba, ga, ta, wb, bb, gb, tb)

    big1 = big_block_params(keys[1], keys[2])
    big2 = big_block_params(keys[3], keys[4])

    w2, b2 = _linear_params(keys[5], hidden_dim, 1)

    return (w1, b1) + big1 + big2 + (w2, b2)


def pack_baseline_params(params, input_dim):
    """Pack all parameters into ONE slab (5*D + 11*8, D) for the kernel.

    - The four BN-feeding linear biases are dropped (training-mode BN cancels
      them exactly).
    - All matrices are zero-padded to (D, D) with D = hidden_dim, so padded
      rows/columns contribute exact zeros everywhere downstream (gamma/beta
      padding must stay zero for this to hold).
    - Each per-feature vector is replicated across 8 sublanes at an 8-row
      aligned offset so the kernel reads it as an aligned (B, D) tile.
    """
    (w1, b1,
     g1wa, _g1ba, g1ga, g1ta, g1wb, _g1bb, g1gb, g1tb,
     g2wa, _g2ba, g2ga, g2ta, g2wb, _g2bb, g2gb, g2tb,
     w2, b2) = params
    D = int(1.5 * input_dim)

    def pad_mat(w):
        out = jnp.zeros((D, D), jnp.float32)
        return out.at[: w.shape[0], : w.shape[1]].set(w)

    def rep_vec(v):
        v = jnp.asarray(v, jnp.float32).reshape(-1)
        row = jnp.zeros((D,), jnp.float32).at[: v.shape[0]].set(v)
        return jnp.tile(row[None, :], (_VREP, 1))            # (8, D)

    mats = [pad_mat(w1),
            pad_mat(g1wa), pad_mat(g1wb),
            pad_mat(g2wa), pad_mat(g2wb)]                     # 5 x (D, D)

    vecs = [b1,
            g1ga, g1ta, g1gb, g1tb,
            g2ga, g2ta, g2gb, g2tb,
            w2[:, 0],                                         # head weight row
            b2]                                               # head bias (scalar)

    slab = jnp.concatenate(mats + [rep_vec(v) for v in vecs], axis=0)
    return slab                                               # (5*D + 88, D)


# ----------------------- pure-JAX reference (check) ------------------------

def _reference_forward(x, params):
    (w1, b1,
     g1wa, g1ba, g1ga, g1ta, g1wb, g1bb, g1gb, g1tb,
     g2wa, g2ba, g2ga, g2ta, g2wb, g2bb, g2gb, g2tb,
     w2, b2) = params

    def lin(h, w, b):
        return h @ w + b

    def bn(h, g, t):
        m = jnp.mean(h, axis=0, keepdims=True)
        v = jnp.mean((h - m) ** 2, axis=0, keepdims=True)
        return (h - m) / jnp.sqrt(v + _EPS) * g + t

    def big(h, wa, ba, ga, ta, wb, bb, gb, tb):
        y = jnp.maximum(bn(lin(h, wa, ba), ga, ta), 0.0)
        y = bn(lin(y, wb, bb), gb, tb)
        return jnp.maximum(y + h, 0.0)

    h = lin(x, w1, b1)
    h = big(h, g1wa, g1ba, g1ga, g1ta, g1wb, g1bb, g1gb, g1tb)
    h = big(h, g2wa, g2ba, g2ga, g2ta, g2wb, g2bb, g2gb, g2tb)
    return lin(h, w2, b2)[:, 0]


if __name__ == "__main__":
    key = jax.random.PRNGKey(0)
    k_x, k_p = jax.random.split(key)

    batch, input_dim = 8, 16          # hidden_dim = 24
    x = jax.random.normal(k_x, (batch, input_dim), jnp.float32)
    params = make_baseline_params(k_p, input_dim)
    p_slab = pack_baseline_params(params, input_dim)

    out = baseline_forward(x, p_slab)
    out = jax.block_until_ready(out)

    ref = _reference_forward(x, params)
    assert out.shape == (batch,)
    assert jnp.allclose(out, ref, atol=1e-4, rtol=1e-4), (out, ref)

    print("KERNEL_OK")
</pallas_src>

<mosaic_0001>
module attributes {stable_mosaic.version = 11 : i64} {
  func.func @_baseline_kernel(%arg0: memref<8x24xf32, #tpu.memory_space<vmem>>, %arg1: memref<208x24xf32, #tpu.memory_space<vmem>>, %arg2: memref<8x1xf32, #tpu.memory_space<vmem>>) attributes {dimension_semantics = [], scalar_prefetch = 0 : i64, scratch_operands = 0 : i64, tpu.core_type = #tpu.core_type<tc>} {
    %c0 = arith.constant 0 : index
    %c0_0 = arith.constant 0 : index
    %0 = vector.load %arg0[%c0, %c0_0] : memref<8x24xf32, #tpu.memory_space<vmem>>, vector<8x24xf32>
    %c0_1 = arith.constant 0 : index
    %c0_2 = arith.constant 0 : index
    %1 = vector.load %arg1[%c0_1, %c0_2] : memref<208x24xf32, #tpu.memory_space<vmem>>, vector<24x24xf32>
    %cst = arith.constant dense<0.000000e+00> : vector<8x24xf32>
    %2 = tpu.matmul %0, %1, %cst {dimension_numbers = #tpu.dot_dimension_numbers<[1], [0], [0], [1], [0, 0, 1, 1], [], []>} : vector<8x24xf32>, vector<24x24xf32>, vector<8x24xf32> -> vector<8x24xf32>
    %c120 = arith.constant 120 : index
    %c0_3 = arith.constant 0 : index
    %3 = vector.load %arg1[%c120, %c0_3] : memref<208x24xf32, #tpu.memory_space<vmem>>, vector<8x24xf32>
    %4 = arith.addf %2, %3 : vector<8x24xf32>
    %c24 = arith.constant 24 : index
    %c0_4 = arith.constant 0 : index
    %5 = vector.load %arg1[%c24, %c0_4] : memref<208x24xf32, #tpu.memory_space<vmem>>, vector<24x24xf32>
    %c128 = arith.constant 128 : index
    %c0_5 = arith.constant 0 : index
    %6 = vector.load %arg1[%c128, %c0_5] : memref<208x24xf32, #tpu.memory_space<vmem>>, vector<8x24xf32>
    %c136 = arith.constant 136 : index
    %c0_6 = arith.constant 0 : index
    %7 = vector.load %arg1[%c136, %c0_6] : memref<208x24xf32, #tpu.memory_space<vmem>>, vector<8x24xf32>
    %c48 = arith.constant 48 : index
    %c0_7 = arith.constant 0 : index
    %8 = vector.load %arg1[%c48, %c0_7] : memref<208x24xf32, #tpu.memory_space<vmem>>, vector<24x24xf32>
    %c144 = arith.constant 144 : index
    %c0_8 = arith.constant 0 : index
    %9 = vector.load %arg1[%c144, %c0_8] : memref<208x24xf32, #tpu.memory_space<vmem>>, vector<8x24xf32>
    %c152 = arith.constant 152 : index
    %c0_9 = arith.constant 0 : index
    %10 = vector.load %arg1[%c152, %c0_9] : memref<208x24xf32, #tpu.memory_space<vmem>>, vector<8x24xf32>
    %cst_10 = arith.constant dense<0.000000e+00> : vector<8x24xf32>
    %11 = tpu.matmul %4, %5, %cst_10 {dimension_numbers = #tpu.dot_dimension_numbers<[1], [0], [0], [1], [0, 0, 1, 1], [], []>} : vector<8x24xf32>, vector<24x24xf32>, vector<8x24xf32> -> vector<8x24xf32>
    %cst_11 = arith.constant dense<0.000000e+00> : vector<24xf32>
    %12 = vector.multi_reduction <add>, %11, %cst_11 [0] : vector<8x24xf32> to vector<24xf32>
    %13 = vector.shape_cast %12 : vector<24xf32> to vector<1x24xf32>
    %cst_12 = arith.constant 1.250000e-01 : f32
    %14 = vector.broadcast %cst_12 : f32 to vector<1x24xf32>
    %15 = arith.mulf %13, %14 : vector<1x24xf32>
    %16 = arith.mulf %11, %11 : vector<8x24xf32>
    %cst_13 = arith.constant dense<0.000000e+00> : vector<24xf32>
    %17 = vector.multi_reduction <add>, %16, %cst_13 [0] : vector<8x24xf32> to vector<24xf32>
    %18 = vector.shape_cast %17 : vector<24xf32> to vector<1x24xf32>
    %cst_14 = arith.constant 1.250000e-01 : f32
    %19 = vector.broadcast %cst_14 : f32 to vector<1x24xf32>
    %20 = arith.mulf %18, %19 : vector<1x24xf32>
    %21 = arith.mulf %15, %15 : vector<1x24xf32>
    %22 = arith.subf %20, %21 : vector<1x24xf32>
    %cst_15 = arith.constant 0.000000e+00 : f32
    %23 = vector.broadcast %cst_15 : f32 to vector<1x24xf32>
    %24 = arith.maximumf %22, %23 : vector<1x24xf32>
    %cst_16 = arith.constant 9.99999974E-6 : f32
    %25 = vector.broadcast %cst_16 : f32 to vector<1x24xf32>
    %26 = arith.addf %24, %25 : vector<1x24xf32>
    %27 = math.rsqrt %26 : vector<1x24xf32>
    %28 = vector.broadcast %15 : vector<1x24xf32> to vector<8x24xf32>
    %29 = arith.mulf %28, %6 : vector<8x24xf32>
    %30 = vector.broadcast %27 : vector<1x24xf32> to vector<8x24xf32>
    %31 = arith.mulf %6, %30 : vector<8x24xf32>
    %32 = vector.broadcast %27 : vector<1x24xf32> to vector<8x24xf32>
    %33 = arith.mulf %29, %32 : vector<8x24xf32>
    %34 = arith.subf %7, %33 : vector<8x24xf32>
    %35 = arith.mulf %11, %31 : vector<8x24xf32>
    %36 = arith.addf %35, %34 : vector<8x24xf32>
    %cst_17 = arith.constant 0.000000e+00 : f32
    %37 = vector.broadcast %cst_17 : f32 to vector<8x24xf32>
    %38 = arith.maximumf %36, %37 : vector<8x24xf32>
    %cst_18 = arith.constant dense<0.000000e+00> : vector<8x24xf32>
    %39 = tpu.matmul %38, %8, %cst_18 {dimension_numbers = #tpu.dot_dimension_numbers<[1], [0], [0], [1], [0, 0, 1, 1], [], []>} : vector<8x24xf32>, vector<24x24xf32>, vector<8x24xf32> -> vector<8x24xf32>
    %cst_19 = arith.constant dense<0.000000e+00> : vector<24xf32>
    %40 = vector.multi_reduction <add>, %39, %cst_19 [0] : vector<8x24xf32> to vector<24xf32>
    %41 = vector.shape_cast %40 : vector<24xf32> to vector<1x24xf32>
    %cst_20 = arith.constant 1.250000e-01 : f32
    %42 = vector.broadcast %cst_20 : f32 to vector<1x24xf32>
    %43 = arith.mulf %41, %42 : vector<1x24xf32>
    %44 = arith.mulf %39, %39 : vector<8x24xf32>
    %cst_21 = arith.constant dense<0.000000e+00> : vector<24xf32>
    %45 = vector.multi_reduction <add>, %44, %cst_21 [0] : vector<8x24xf32> to vector<24xf32>
    %46 = vector.shape_cast %45 : vector<24xf32> to vector<1x24xf32>
    %cst_22 = arith.constant 1.250000e-01 : f32
    %47 = vector.broadcast %cst_22 : f32 to vector<1x24xf32>
    %48 = arith.mulf %46, %47 : vector<1x24xf32>
    %49 = arith.mulf %43, %43 : vector<1x24xf32>
    %50 = arith.subf %48, %49 : vector<1x24xf32>
    %cst_23 = arith.constant 0.000000e+00 : f32
    %51 = vector.broadcast %cst_23 : f32 to vector<1x24xf32>
    %52 = arith.maximumf %50, %51 : vector<1x24xf32>
    %cst_24 = arith.constant 9.99999974E-6 : f32
    %53 = vector.broadcast %cst_24 : f32 to vector<1x24xf32>
    %54 = arith.addf %52, %53 : vector<1x24xf32>
    %55 = math.rsqrt %54 : vector<1x24xf32>
    %56 = vector.broadcast %43 : vector<1x24xf32> to vector<8x24xf32>
    %57 = arith.mulf %56, %9 : vector<8x24xf32>
    %58 = vector.broadcast %55 : vector<1x24xf32> to vector<8x24xf32>
    %59 = arith.mulf %9, %58 : vector<8x24xf32>
    %60 = vector.broadcast %55 : vector<1x24xf32> to vector<8x24xf32>
    %61 = arith.mulf %57, %60 : vector<8x24xf32>
    %62 = arith.subf %10, %61 : vector<8x24xf32>
    %63 = arith.mulf %39, %59 : vector<8x24xf32>
    %64 = arith.addf %63, %62 : vector<8x24xf32>
    %65 = arith.addf %64, %4 : vector<8x24xf32>
    %cst_25 = arith.constant 0.000000e+00 : f32
    %66 = vector.broadcast %cst_25 : f32 to vector<8x24xf32>
    %67 = arith.maximumf %65, %66 : vector<8x24xf32>
    %c72 = arith.constant 72 : index
    %c0_26 = arith.constant 0 : index
    %68 = vector.load %arg1[%c72, %c0_26] : memref<208x24xf32, #tpu.memory_space<vmem>>, vector<24x24xf32>
    %c160 = arith.constant 160 : index
    %c0_27 = arith.constant 0 : index
    %69 = vector.load %arg1[%c160, %c0_27] : memref<208x24xf32, #tpu.memory_space<vmem>>, vector<8x24xf32>
    %c168 = arith.constant 168 : index
    %c0_28 = arith.constant 0 : index
    %70 = vector.load %arg1[%c168, %c0_28] : memref<208x24xf32, #tpu.memory_space<vmem>>, vector<8x24xf32>
    %c96 = arith.constant 96 : index
    %c0_29 = arith.constant 0 : index
    %71 = vector.load %arg1[%c96, %c0_29] : memref<208x24xf32, #tpu.memory_space<vmem>>, vector<24x24xf32>
    %c176 = arith.constant 176 : index
    %c0_30 = arith.constant 0 : index
    %72 = vector.load %arg1[%c176, %c0_30] : memref<208x24xf32, #tpu.memory_space<vmem>>, vector<8x24xf32>
    %c184 = arith.constant 184 : index
    %c0_31 = arith.constant 0 : index
    %73 = vector.load %arg1[%c184, %c0_31] : memref<208x24xf32, #tpu.memory_space<vmem>>, vector<8x24xf32>
    %cst_32 = arith.constant dense<0.000000e+00> : vector<8x24xf32>
    %74 = tpu.matmul %67, %68, %cst_32 {dimension_numbers = #tpu.dot_dimension_numbers<[1], [0], [0], [1], [0, 0, 1, 1], [], []>} : vector<8x24xf32>, vector<24x24xf32>, vector<8x24xf32> -> vector<8x24xf32>
    %cst_33 = arith.constant dense<0.000000e+00> : vector<24xf32>
    %75 = vector.multi_reduction <add>, %74, %cst_33 [0] : vector<8x24xf32> to vector<24xf32>
    %76 = vector.shape_cast %75 : vector<24xf32> to vector<1x24xf32>
    %cst_34 = arith.constant 1.250000e-01 : f32
    %77 = vector.broadcast %cst_34 : f32 to vector<1x24xf32>
    %78 = arith.mulf %76, %77 : vector<1x24xf32>
    %79 = arith.mulf %74, %74 : vector<8x24xf32>
    %cst_35 = arith.constant dense<0.000000e+00> : vector<24xf32>
    %80 = vector.multi_reduction <add>, %79, %cst_35 [0] : vector<8x24xf32> to vector<24xf32>
    %81 = vector.shape_cast %80 : vector<24xf32> to vector<1x24xf32>
    %cst_36 = arith.constant 1.250000e-01 : f32
    %82 = vector.broadcast %cst_36 : f32 to vector<1x24xf32>
    %83 = arith.mulf %81, %82 : vector<1x24xf32>
    %84 = arith.mulf %78, %78 : vector<1x24xf32>
    %85 = arith.subf %83, %84 : vector<1x24xf32>
    %cst_37 = arith.constant 0.000000e+00 : f32
    %86 = vector.broadcast %cst_37 : f32 to vector<1x24xf32>
    %87 = arith.maximumf %85, %86 : vector<1x24xf32>
    %cst_38 = arith.constant 9.99999974E-6 : f32
    %88 = vector.broadcast %cst_38 : f32 to vector<1x24xf32>
    %89 = arith.addf %87, %88 : vector<1x24xf32>
    %90 = math.rsqrt %89 : vector<1x24xf32>
    %91 = vector.broadcast %78 : vector<1x24xf32> to vector<8x24xf32>
    %92 = arith.mulf %91, %69 : vector<8x24xf32>
    %93 = vector.broadcast %90 : vector<1x24xf32> to vector<8x24xf32>
    %94 = arith.mulf %69, %93 : vector<8x24xf32>
    %95 = vector.broadcast %90 : vector<1x24xf32> to vector<8x24xf32>
    %96 = arith.mulf %92, %95 : vector<8x24xf32>
    %97 = arith.subf %70, %96 : vector<8x24xf32>
    %98 = arith.mulf %74, %94 : vector<8x24xf32>
    %99 = arith.addf %98, %97 : vector<8x24xf32>
    %cst_39 = arith.constant 0.000000e+00 : f32
    %100 = vector.broadcast %cst_39 : f32 to vector<8x24xf32>
    %101 = arith.maximumf %99, %100 : vector<8x24xf32>
    %cst_40 = arith.constant dense<0.000000e+00> : vector<8x24xf32>
    %102 = tpu.matmul %101, %71, %cst_40 {dimension_numbers = #tpu.dot_dimension_numbers<[1], [0], [0], [1], [0, 0, 1, 1], [], []>} : vector<8x24xf32>, vector<24x24xf32>, vector<8x24xf32> -> vector<8x24xf32>
    %cst_41 = arith.constant dense<0.000000e+00> : vector<24xf32>
    %103 = vector.multi_reduction <add>, %102, %cst_41 [0] : vector<8x24xf32> to vector<24xf32>
    %104 = vector.shape_cast %103 : vector<24xf32> to vector<1x24xf32>
    %cst_42 = arith.constant 1.250000e-01 : f32
    %105 = vector.broadcast %cst_42 : f32 to vector<1x24xf32>
    %106 = arith.mulf %104, %105 : vector<1x24xf32>
    %107 = arith.mulf %102, %102 : vector<8x24xf32>
    %cst_43 = arith.constant dense<0.000000e+00> : vector<24xf32>
    %108 = vector.multi_reduction <add>, %107, %cst_43 [0] : vector<8x24xf32> to vector<24xf32>
    %109 = vector.shape_cast %108 : vector<24xf32> to vector<1x24xf32>
    %cst_44 = arith.constant 1.250000e-01 : f32
    %110 = vector.broadcast %cst_44 : f32 to vector<1x24xf32>
    %111 = arith.mulf %109, %110 : vector<1x24xf32>
    %112 = arith.mulf %106, %106 : vector<1x24xf32>
    %113 = arith.subf %111, %112 : vector<1x24xf32>
    %cst_45 = arith.constant 0.000000e+00 : f32
    %114 = vector.broadcast %cst_45 : f32 to vector<1x24xf32>
    %115 = arith.maximumf %113, %114 : vector<1x24xf32>
    %cst_46 = arith.constant 9.99999974E-6 : f32
    %116 = vector.broadcast %cst_46 : f32 to vector<1x24xf32>
    %117 = arith.addf %115, %116 : vector<1x24xf32>
    %118 = math.rsqrt %117 : vector<1x24xf32>
    %119 = vector.broadcast %106 : vector<1x24xf32> to vector<8x24xf32>
    %120 = arith.mulf %119, %72 : vector<8x24xf32>
    %121 = vector.broadcast %118 : vector<1x24xf32> to vector<8x24xf32>
    %122 = arith.mulf %72, %121 : vector<8x24xf32>
    %123 = vector.broadcast %118 : vector<1x24xf32> to vector<8x24xf32>
    %124 = arith.mulf %120, %123 : vector<8x24xf32>
    %125 = arith.subf %73, %124 : vector<8x24xf32>
    %126 = arith.mulf %102, %122 : vector<8x24xf32>
    %127 = arith.addf %126, %125 : vector<8x24xf32>
    %128 = arith.addf %127, %67 : vector<8x24xf32>
    %cst_47 = arith.constant 0.000000e+00 : f32
    %129 = vector.broadcast %cst_47 : f32 to vector<8x24xf32>
    %130 = arith.maximumf %128, %129 : vector<8x24xf32>
    %c192 = arith.constant 192 : index
    %c0_48 = arith.constant 0 : index
    %131 = vector.load %arg1[%c192, %c0_48] : memref<208x24xf32, #tpu.memory_space<vmem>>, vector<8x24xf32>
    %132 = arith.mulf %130, %131 : vector<8x24xf32>
    %cst_49 = arith.constant dense<0.000000e+00> : vector<8xf32>
    %133 = vector.multi_reduction <add>, %132, %cst_49 [1] : vector<8x24xf32> to vector<8xf32>
    %134 = vector.shape_cast %133 : vector<8xf32> to vector<8x1xf32>
    %c200 = arith.constant 200 : index
    %c0_50 = arith.constant 0 : index
    %135 = vector.load %arg1[%c200, %c0_50] : memref<208x24xf32, #tpu.memory_space<vmem>>, vector<8x24xf32>
    %136 = vector.extract_strided_slice %135 {offsets = [0, 0], sizes = [8, 1], strides = [1, 1]} : vector<8x24xf32> to vector<8x1xf32>
    %137 = arith.addf %134, %136 : vector<8x1xf32>
    %c0_51 = arith.constant 0 : index
    %c0_52 = arith.constant 0 : index
    %138 = vector.load %arg2[%c0_51, %c0_52] : memref<8x1xf32, #tpu.memory_space<vmem>>, vector<8x1xf32>
    tpu.vector_store %arg2[%c0_51, %c0_52], %137 {strides = array<i32>} : memref<8x1xf32, #tpu.memory_space<vmem>>, vector<8x1xf32>,
    return
  }
}

</mosaic_0001>

<bundles_post_ra>
// kernel: tpu_custom_call.1
= control target key start
LH: loop header
LB: loop body
LE: loop exit
PB: predicated region body
PF: predicated region fallthrough
CT: control target
= control target key end

     0   :  { %vm16_vm0 = vcmask 195584   ;;  %vm313_vm13 = vcmask 7168   ;;  %s456_s1 = inlined_call_operand.vmem [shape: f32[208,24], index: 1, kind: input, shape index: {}]   ;;  %s457_s0 = inlined_call_operand.vmem [shape: f32[8,24], index: 0, kind: input, shape index: {}]   ;;  %s458_s2 = inlined_call_operand.vmem [shape: f32[8,1], index: 2, kind: output, shape index: {}]  }
   0x1   :  { %v14_v0 = vld [vmem:[%s456_s1 + $0x10] sm:$0xff]  ;;  %v13_v1 = vld [vmem:[%s456_s1 + $0x8] sm:$0xff]  ;;  %v12_v3 = vld [vmem:[%s456_s1] sm:$0xff] }
   0x2   :  { %33 = vmatpush.msra.mxu0 %v14_v0  ;;  %v42_v2 = vld [vmem:[%s456_s1 + $0x28] sm:$0xff]  ;;  %v11_v4 = vld [vmem:[%s457_s0] sm:$0xff]  ;;  %v40_v6 = vld [vmem:[%s456_s1 + $0x18] sm:$0xff] }
   0x3   :  { %66 = vmatpush.msra.mxu1 %v42_v2  ;;  %v41_v5 = vld [vmem:[%s456_s1 + $0x20] sm:$0xff]  ;;  %v15_v7 = vld [vmem:[%s456_s1 + $0x78] sm:$0xff]  ;;  %v45_v29 = vld [vmem:[%s456_s1 + $0x30] sm:$0xff] }
   0x4   :  { %34 = vmatpush.msra.mxu0 %v13_v1  ;;  %v47_v25 = vld [vmem:[%s456_s1 + $0x40] sm:$0xff]  ;;  %v46_v28 = vld [vmem:[%s456_s1 + $0x38] sm:$0xff]  ;;  %v44_v43 = vld [vmem:[%s456_s1 + $0x88] sm:$0xff] }
   0x5   :  { %67 = vmatpush.msra.mxu1 %v41_v5  ;;  %127 = vmatpush.msra.mxu2 %v47_v25  ;;  %v43_v39 = vld [vmem:[%s456_s1 + $0x80] sm:$0xff]  ;;  %v174_v5 = vld [vmem:[%s456_s1 + $0x50] sm:$0xff] }
   0x6   :  { %35 = vmatpush.msra.mxu0 %v12_v3 }
   0x7   :  { %319 = vmatmul.msk.f32.vlgmr.msra.gmra.mxu0 %vm16_vm0, %v11_v4  ;;  %68 = vmatpush.msra.mxu1 %v40_v6  ;;  %v175_v4 = vld [vmem:[%s456_s1 + $0x58] sm:$0xff] }
   0x8   :  { %128 = vmatpush.msra.mxu2 %v46_v28  ;;  %199 = vmatpush.msra.mxu3 %v175_v4 }
   0xa   :  { %129 = vmatpush.msra.mxu2 %v45_v29  ;;  %200 = vmatpush.msra.mxu3 %v174_v5 }
  0x84   :  { %v37_v8 = vpop.f32.mrf.mxu0 }
  0x85   :  { %v372_v9 = vadd.f32 %v37_v8, %v15_v7  ;;  %v173_v8 = vld [vmem:[%s456_s1 + $0x48] sm:$0xff] }
  0x86   :  { %201 = vmatpush.msra.mxu3 %v173_v8 }
  0x87   :  { %320 = vmatmul.msk.f32.vlgmr.msra.gmra.mxu1 %vm16_vm0, %v372_v9 }
 0x104   :  { %v70_v10 = vpop.f32.mrf.mxu1 }
 0x105   :  { %v73_v11 = vsel %vm16_vm0, %v70_v10, 0.0  ;;  %v81_v12 = vmul.f32 %v70_v10, %v70_v10 }
 0x106   :  { %v74_v13 = vrot.slane %v73_v11, 4 }
 0x107   :  { %v82_v14 = vsel %vm16_vm0, %v81_v12, 0.0 }
 0x108   :  { %v75_v15 = vadd.f32 %v74_v13, %v73_v11  ;;  %v83_v16 = vrot.slane %v82_v14, 4 }
 0x10a   :  { %v76_v17 = vrot.slane %v75_v15, 2  ;;  %v84_v18 = vadd.f32 %v83_v16, %v82_v14 }
 0x10c   :  { %v77_v19 = vadd.f32 %v76_v17, %v75_v15  ;;  %v85_v20 = vrot.slane %v84_v18, 2  ;;  %v48_v17 = vld [vmem:[%s456_s1 + $0x90] sm:$0xff] }
 0x10e   :  { %v78_v21 = vrot.slane %v77_v19, 1  ;;  %v86_v22 = vadd.f32 %v85_v20, %v84_v18 }
 0x110   :  { %v79_v23 = vadd.f32 %v78_v21, %v77_v19  ;;  %v87_v24 = vrot.slane %v86_v22, 1  ;;  %v49_v21 = vld [vmem:[%s456_s1 + $0x98] sm:$0xff] }
 0x112   :  { %v80_v26 = vmul.f32 0.125, %v79_v23  ;;  %v88_v27 = vadd.f32 %v87_v24, %v86_v22 }
 0x114   :  { %v89_v30 = vmul.f32 0.125, %v88_v27  ;;  %v90_v31 = vmul.f32 %v80_v26, %v80_v26  ;;  %v104_v42 = vmul.f32 %v80_v26, %v43_v39 }
 0x116   :  { %v91_v32 = vsub.f32 %v89_v30, %v90_v31 }
 0x118   :  { %v92_v33 = vmax.f32 %v91_v32, 0.0 }
 0x11a   :  { %v93_v34 = vadd.f32 1e-05, %v92_v33 }
 0x11c   :  { %324 = vrsqrt.f32 %v93_v34  ;;  %vm100_vm2 = vweird.f32 %v93_v34 }
 0x122   :  { %v325_v35 = vpop.eup %324 }
 0x123   :  { %v95_v36 = vmul.f32 %v325_v35, %v93_v34  ;;  %vm101_vm1 = vweird.f32 %v325_v35 }
 0x124   :  { %vm102_vm3 = vmor %vm100_vm2, %vm101_vm1 }
 0x125   :  { %v96_v37 = vmul.f32 %v325_v35, %v95_v36 }
 0x127   :  { %v97_v38 = vmul.f32 0.5, %v96_v37 }
 0x129   :  { %v98_v40 = vsub.f32 1.5, %v97_v38 }
 0x12b   :  { %v99_v41 = vmul.f32 %v325_v35, %v98_v40 }
 0x12d   :  { %v103_v44 = vsel %vm102_vm3, %v325_v35, %v99_v41 }
 0x12e   :  { %v105_v45 = vmul.f32 %v103_v44, %v43_v39  ;;  %v106_v46 = vmul.f32 %v104_v42, %v103_v44  ;;  %v180_v44 = vld [vmem:[%s456_s1 + $0x70] sm:$0xff] }
 0x12f   :  { %260 = vmatpush.msrb.mxu0 %v180_v44 }
 0x130   :  { %v107_v47 = vsub.f32 %v44_v43, %v106_v46  ;;  %v108_v48 = vmul.f32 %v105_v45, %v70_v10 }
 0x132   :  { %v109_v49 = vadd.f32 %v108_v48, %v107_v47  ;;  %v179_v47 = vld [vmem:[%s456_s1 + $0x68] sm:$0xff] }
 0x133   :  { %261 = vmatpush.msrb.mxu0 %v179_v47 }
 0x134   :  { %v110_v50 = vmax.f32 %v109_v49, 0.0 }
 0x136   :  { %321 = vmatmul.msk.f32.vlgmr.msra.gmra.mxu2 %vm16_vm0, %v110_v50  ;;  %v178_v50 = vld [vmem:[%s456_s1 + $0x60] sm:$0xff] }
 0x137   :  { %262 = vmatpush.msrb.mxu0 %v178_v50  ;;  %v311_v50 = vld [vmem:[%s456_s1 + $0xc8] sm:$0xff] }
 0x1b9   :  { %v131_v51 = vpop.f32.mrf.mxu2 }
 0x1ba   :  { %v134_v52 = vsel %vm16_vm0, %v131_v51, 0.0  ;;  %v142_v53 = vmul.f32 %v131_v51, %v131_v51 }
 0x1bb   :  { %v135_v54 = vrot.slane %v134_v52, 4 }
 0x1bc   :  { %v143_v55 = vsel %vm16_vm0, %v142_v53, 0.0 }
 0x1bd   :  { %v136_v56 = vadd.f32 %v135_v54, %v134_v52  ;;  %v144_v57 = vrot.slane %v143_v55, 4 }
 0x1bf   :  { %v137_v58 = vrot.slane %v136_v56, 2  ;;  %v145_v59 = vadd.f32 %v144_v57, %v143_v55 }
 0x1c1   :  { %v138_v60 = vadd.f32 %v137_v58, %v136_v56  ;;  %v146_v61 = vrot.slane %v145_v59, 2  ;;  %v176_v58 = vld [vmem:[%s456_s1 + $0xa0] sm:$0xff] }
 0x1c3   :  { %v139_v62 = vrot.slane %v138_v60, 1  ;;  %v147_v63 = vadd.f32 %v146_v61, %v145_v59 }
 0x1c5   :  { %v140_v0 = vadd.f32 %v139_v62, %v138_v60  ;;  %v148_v1 = vrot.slane %v147_v63, 1  ;;  %v177_v62 = vld [vmem:[%s456_s1 + $0xa8] sm:$0xff] }
 0x1c7   :  { %v141_v2 = vmul.f32 0.125, %v140_v0  ;;  %v149_v3 = vadd.f32 %v148_v1, %v147_v63 }
 0x1c9   :  { %v150_v6 = vmul.f32 0.125, %v149_v3  ;;  %v151_v7 = vmul.f32 %v141_v2, %v141_v2  ;;  %v165_v20 = vmul.f32 %v141_v2, %v48_v17 }
 0x1cb   :  { %v152_v10 = vsub.f32 %v150_v6, %v151_v7 }
 0x1cd   :  { %v153_v11 = vmax.f32 %v152_v10, 0.0 }
 0x1cf   :  { %v154_v12 = vadd.f32 1e-05, %v153_v11 }
 0x1d1   :  { %326 = vrsqrt.f32 %v154_v12  ;;  %vm161_vm5 = vweird.f32 %v154_v12 }
 0x1d7   :  { %v327_v13 = vpop.eup %326 }
 0x1d8   :  { %v156_v14 = vmul.f32 %v327_v13, %v154_v12  ;;  %vm162_vm4 = vweird.f32 %v327_v13 }
 0x1d9   :  { %vm163_vm6 = vmor %vm161_vm5, %vm162_vm4 }
 0x1da   :  { %v157_v15 = vmul.f32 %v327_v13, %v156_v14 }
 0x1dc   :  { %v158_v16 = vmul.f32 0.5, %v157_v15 }
 0x1de   :  { %v159_v18 = vsub.f32 1.5, %v158_v16 }
 0x1e0   :  { %v160_v19 = vmul.f32 %v327_v13, %v159_v18 }
 0x1e2   :  { %v164_v22 = vsel %vm163_vm6, %v327_v13, %v160_v19 }
 0x1e3   :  { %v166_v23 = vmul.f32 %v164_v22, %v48_v17  ;;  %v167_v24 = vmul.f32 %v165_v20, %v164_v22 }
 0x1e5   :  { %v168_v25 = vsub.f32 %v49_v21, %v167_v24  ;;  %v169_v26 = vmul.f32 %v166_v23, %v131_v51 }
 0x1e7   :  { %v170_v27 = vadd.f32 %v169_v26, %v168_v25 }
 0x1e9   :  { %v412_v28 = vadd.f32 %v170_v27, %v372_v9 }
 0x1eb   :  { %v172_v29 = vmax.f32 %v412_v28, 0.0 }
 0x1ed   :  { %322 = vmatmul.msk.f32.vlgmr.msra.gmra.mxu3 %vm16_vm0, %v172_v29 }
 0x270   :  { %v203_v30 = vpop.f32.mrf.mxu3 }
 0x271   :  { %v206_v31 = vsel %vm16_vm0, %v203_v30, 0.0  ;;  %v214_v32 = vmul.f32 %v203_v30, %v203_v30 }
 0x272   :  { %v207_v33 = vrot.slane %v206_v31, 4 }
 0x273   :  { %v215_v34 = vsel %vm16_vm0, %v214_v32, 0.0 }
 0x274   :  { %v208_v35 = vadd.f32 %v207_v33, %v206_v31  ;;  %v216_v36 = vrot.slane %v215_v34, 4 }
 0x276   :  { %v209_v37 = vrot.slane %v208_v35, 2  ;;  %v217_v38 = vadd.f32 %v216_v36, %v215_v34 }
 0x278   :  { %v210_v39 = vadd.f32 %v209_v37, %v208_v35  ;;  %v218_v9 = vrot.slane %v217_v38, 2  ;;  %v181_v35 = vld [vmem:[%s456_s1 + $0xb0] sm:$0xff] }
 0x27a   :  { %v211_v40 = vrot.slane %v210_v39, 1  ;;  %v219_v41 = vadd.f32 %v218_v9, %v217_v38 }
 0x27c   :  { %v212_v42 = vadd.f32 %v211_v40, %v210_v39  ;;  %v220_v43 = vrot.slane %v219_v41, 1  ;;  %v182_v39 = vld [vmem:[%s456_s1 + $0xb8] sm:$0xff] }
 0x27e   :  { %v213_v45 = vmul.f32 0.125, %v212_v42  ;;  %v221_v46 = vadd.f32 %v220_v43, %v219_v41 }
 0x280   :  { %v222_v48 = vmul.f32 0.125, %v221_v46  ;;  %v223_v49 = vmul.f32 %v213_v45, %v213_v45  ;;  %v237_v61 = vmul.f32 %v213_v45, %v176_v58  ;;  %v306_v46 = vld [vmem:[%s456_s1 + $0xc0] sm:$0xff] }
 0x282   :  { %v224_v51 = vsub.f32 %v222_v48, %v223_v49 }
 0x284   :  { %v225_v52 = vmax.f32 %v224_v51, 0.0 }
 0x286   :  { %v226_v53 = vadd.f32 1e-05, %v225_v52 }
 0x288   :  { %328 = vrsqrt.f32 %v226_v53  ;;  %vm233_vm8 = vweird.f32 %v226_v53 }
 0x28e   :  { %v329_v54 = vpop.eup %328 }
 0x28f   :  { %v228_v55 = vmul.f32 %v329_v54, %v226_v53  ;;  %vm234_vm7 = vweird.f32 %v329_v54 }
 0x290   :  { %vm235_vm9 = vmor %vm233_vm8, %vm234_vm7 }
 0x291   :  { %v229_v56 = vmul.f32 %v329_v54, %v228_v55 }
 0x293   :  { %v230_v57 = vmul.f32 0.5, %v229_v56 }
 0x295   :  { %v231_v59 = vsub.f32 1.5, %v230_v57 }
 0x297   :  { %v232_v60 = vmul.f32 %v329_v54, %v231_v59 }
 0x299   :  { %v236_v63 = vsel %vm235_vm9, %v329_v54, %v232_v60 }
 0x29a   :  { %v238_v0 = vmul.f32 %v236_v63, %v176_v58  ;;  %v239_v1 = vmul.f32 %v237_v61, %v236_v63 }
 0x29c   :  { %v240_v2 = vsub.f32 %v177_v62, %v239_v1  ;;  %v241_v3 = vmul.f32 %v238_v0, %v203_v30 }
 0x29e   :  { %v242_v4 = vadd.f32 %v241_v3, %v240_v2 }
 0x2a0   :  { %v243_v5 = vmax.f32 %v242_v4, 0.0 }
 0x2a2   :  { %323 = vmatmul.msk.f32.vlgmr.msrb.gmra.mxu0 %vm16_vm0, %v243_v5 }
 0x31f   :  { %v264_v6 = vpop.f32.mrf.mxu0 }
 0x320   :  { %v267_v7 = vsel %vm16_vm0, %v264_v6, 0.0  ;;  %v275_v8 = vmul.f32 %v264_v6, %v264_v6 }
 0x321   :  { %v268_v10 = vrot.slane %v267_v7, 4 }
 0x322   :  { %v276_v11 = vsel %vm16_vm0, %v275_v8, 0.0 }
 0x323   :  { %v269_v12 = vadd.f32 %v268_v10, %v267_v7  ;;  %v277_v13 = vrot.slane %v276_v11, 4 }
 0x325   :  { %v270_v14 = vrot.slane %v269_v12, 2  ;;  %v278_v15 = vadd.f32 %v277_v13, %v276_v11 }
 0x327   :  { %v271_v16 = vadd.f32 %v270_v14, %v269_v12  ;;  %v279_v17 = vrot.slane %v278_v15, 2 }
 0x329   :  { %v272_v18 = vrot.slane %v271_v16, 1  ;;  %v280_v19 = vadd.f32 %v279_v17, %v278_v15 }
 0x32b   :  { %v273_v20 = vadd.f32 %v272_v18, %v271_v16  ;;  %v281_v21 = vrot.slane %v280_v19, 1 }
 0x32d   :  { %v274_v22 = vmul.f32 0.125, %v273_v20  ;;  %v282_v23 = vadd.f32 %v281_v21, %v280_v19 }
 0x32f   :  { %v283_v24 = vmul.f32 0.125, %v282_v23  ;;  %v284_v25 = vmul.f32 %v274_v22, %v274_v22  ;;  %v298_v38 = vmul.f32 %v274_v22, %v181_v35 }
 0x331   :  { %v285_v26 = vsub.f32 %v283_v24, %v284_v25 }
 0x333   :  { %v286_v27 = vmax.f32 %v285_v26, 0.0 }
 0x335   :  { %v287_v30 = vadd.f32 1e-05, %v286_v27 }
 0x337   :  { %330 = vrsqrt.f32 %v287_v30  ;;  %vm294_vm11 = vweird.f32 %v287_v30 }
 0x33d   :  { %v331_v31 = vpop.eup %330 }
 0x33e   :  { %v289_v32 = vmul.f32 %v331_v31, %v287_v30  ;;  %vm295_vm10 = vweird.f32 %v331_v31 }
 0x33f   :  { %vm296_vm12 = vmor %vm294_vm11, %vm295_vm10 }
 0x340   :  { %v290_v33 = vmul.f32 %v331_v31, %v289_v32 }
 0x342   :  { %v291_v34 = vmul.f32 0.5, %v290_v33 }
 0x344   :  { %v292_v36 = vsub.f32 1.5, %v291_v34 }
 0x346   :  { %v293_v37 = vmul.f32 %v331_v31, %v292_v36 }
 0x348   :  { %v297_v9 = vsel %vm296_vm12, %v331_v31, %v293_v37 }
 0x349   :  { %v299_v40 = vmul.f32 %v297_v9, %v181_v35  ;;  %v300_v41 = vmul.f32 %v298_v38, %v297_v9 }
 0x34b   :  { %v301_v42 = vsub.f32 %v182_v39, %v300_v41  ;;  %v302_v43 = vmul.f32 %v299_v40, %v264_v6 }
 0x34d   :  { %v303_v44 = vadd.f32 %v302_v43, %v301_v42 }
 0x34f   :  { %v304_v45 = vadd.f32 %v303_v44, %v172_v29 }
 0x351   :  { %v305_v47 = vmax.f32 %v304_v45, 0.0 }
 0x353   :  { %v307_v48 = vmul.f32 %v306_v46, %v305_v47 }
 0x355   :  { %v308_v49 = vsel %vm16_vm0, %v307_v48, 0.0 }
 0x356   :  { %309 = vadd.xlane.f32.xlu0 %v308_v49 }
 0x3c9   :  { %v310_v51 = vpop.xlane.xlu0 %309 }
 0x3ca   :  { %v312_v52 = vadd.f32 %v311_v50, %v310_v51 }
 0x3cc   :  { %314 = vst.msk [vmem:[%s458_s2] sm:$0xff] %vm313_vm13, %v312_v52 }

</bundles_post_ra>
